<compile_context>
chip_gen: v7x
topology: tpu7x:2x2x1
jax: 0.10.0
libtpu: 0.0.40
codegen_flags: <defaults>
</compile_context>

<pallas_src>
import functools

import jax
import jax.numpy as jnp
from jax.experimental import pallas as pl
from jax.experimental.pallas import tpu as pltpu

LANE = 128
MAX_TILE_ROWS = 1024   # 1024x128 f32 block = 512 KiB; ~2.5 MiB VMEM w/ dbl-buffer
NCORES = 2             # megacore split of the reduction (v7x); no-op on 1-TC chips


def _round_up(x, m):
    return (x + m - 1) // m * m


def _focal_loss_kernel(p_ref, t_ref, o_ref, acc_ref, *, gamma, inv_n,
                       pos_weight):
    j = pl.program_id(1)

    @pl.when(j == 0)
    def _init():
        acc_ref[...] = jnp.zeros_like(acc_ref)

    p_in = p_ref[...]
    is_pos = t_ref[...] != 0          # targets.bool()

    eps = jnp.float32(1e-10)
    p = jnp.maximum(p_in, eps)
    q = jnp.maximum(1.0 - p_in, eps)

    # One log + one pow per element instead of two of each:
    #   pos: -q**g * log(p)   neg: -p**g * log(q)
    x = jnp.where(is_pos, p, q)       # log argument
    y = jnp.where(is_pos, q, p)       # pow argument
    if gamma == 2:
        y_pow = y * y                 # stay off the EUP pow (exp/log) path
    else:
        y_pow = y ** jnp.float32(gamma)
    loss = -y_pow * jnp.log(x)
    if pos_weight is not None:
        loss = loss * jnp.where(is_pos, jnp.float32(pos_weight),
                                jnp.float32(1.0))

    # Zero-padded tail (p_in=0, t=0) lands in the negative branch:
    # -(eps^2) * log(1.0) == 0, so no explicit mask is required.
    acc_ref[...] += loss              # pure-VPU elementwise accumulation

    @pl.when(j == pl.num_programs(1) - 1)
    def _finalize():
        partial = jnp.sum(acc_ref[...]) * jnp.float32(inv_n)
        o_ref[...] = jnp.broadcast_to(partial, o_ref.shape).astype(jnp.float32)


def binary_focal_loss(inputs, targets, *, gamma=2, pos_weight=None,
                      reduction="mean"):
    """Pallas TPU implementation of BinaryFocalLoss.forward (mean/sum)."""
    assert reduction in ("mean", "sum"), "only reduced variants implemented"
    # TODO(synk): reduction='none' (full per-element loss map) is not
    # implemented in the kernel; only the reduced scalar paths are.

    flat_p = inputs.reshape(-1).astype(jnp.float32)

    # Keep targets narrow when they already are (binary labels); only the
    # != 0 test is needed in-kernel.
    if targets.dtype == jnp.bool_:
        flat_t = targets.reshape(-1).astype(jnp.int8)
    elif targets.dtype in (jnp.int8, jnp.uint8):
        flat_t = targets.reshape(-1)
    else:
        flat_t = targets.reshape(-1).astype(jnp.float32)

    n = flat_p.shape[0]
    rows = pl.cdiv(n, LANE)

    # Sub-32-bit targets pack 32 rows per sublane tile.
    sublane_align = 32 if flat_t.dtype.itemsize == 1 else 8
    tile_rows = min(MAX_TILE_ROWS, _round_up(rows, sublane_align))

    num_tiles = pl.cdiv(rows, tile_rows)
    ncores = NCORES if num_tiles >= NCORES else 1
    steps_per_core = pl.cdiv(num_tiles, ncores)
    total_tiles = ncores * steps_per_core
    rows_padded = total_tiles * tile_rows
    pad = rows_padded * LANE - n

    if pad:  # skip the HBM copy entirely when already aligned
        flat_p = jnp.pad(flat_p, (0, pad))
        flat_t = jnp.pad(flat_t, (0, pad))

    p2 = flat_p.reshape(rows_padded, LANE)
    t2 = flat_t.reshape(rows_padded, LANE)

    inv_n = (1.0 / n) if reduction == "mean" else 1.0
    kernel = functools.partial(_focal_loss_kernel, gamma=gamma, inv_n=inv_n,
                               pos_weight=pos_weight)

    tile_idx = lambda c, j: (c * steps_per_core + j, 0)
    tile_spec = pl.BlockSpec((tile_rows, LANE), tile_idx)

    out = pl.pallas_call(
        kernel,
        out_shape=jax.ShapeDtypeStruct((ncores, LANE), jnp.float32),
        grid_spec=pltpu.PrefetchScalarGridSpec(
            num_scalar_prefetch=0,
            grid=(ncores, steps_per_core),
            in_specs=[tile_spec, tile_spec],
            out_specs=pl.BlockSpec((1, LANE), lambda c, j: (c, 0)),
            scratch_shapes=[pltpu.VMEM((tile_rows, LANE), jnp.float32)],
        ),
        compiler_params=pltpu.CompilerParams(
            dimension_semantics=("parallel", "arbitrary")),
    )(p2, t2)

    # Sum the per-core partials (lane 0 of each row holds the partial).
    return jnp.sum(out[:, 0])


def _reference(inputs, targets, gamma=2):
    p_in = inputs.astype(jnp.float32)
    t = targets.astype(jnp.float32)
    eps = jnp.float32(1e-10)
    p = jnp.maximum(p_in, eps)
    q = jnp.maximum(1.0 - p_in, eps)
    pos_loss = -(q ** gamma) * jnp.log(p)
    neg_loss = -(p ** gamma) * jnp.log(q)
    loss = jnp.where(t != 0.0, pos_loss, neg_loss)
    return jnp.mean(loss)


if __name__ == "__main__":
    key = jax.random.PRNGKey(0)
    k_p, k_t = jax.random.split(key)

    # NCHW inputs, probabilities in [0, 1), binary targets.
    shape = (2, 4, 16, 16)
    inputs = jax.random.uniform(k_p, shape, dtype=jnp.float32)
    targets = (jax.random.uniform(k_t, shape) > 0.5).astype(jnp.float32)

    loss = binary_focal_loss(inputs, targets, gamma=2, reduction="mean")
    loss = jax.block_until_ready(loss)

    ref = _reference(inputs, targets, gamma=2)
    assert jnp.allclose(loss, ref, rtol=1e-5, atol=1e-6), (loss, ref)

    print("KERNEL_OK")
</pallas_src>

<mosaic_0001>
module attributes {stable_mosaic.version = 11 : i64} {
  func.func @_focal_loss_kernel(%arg0: i32, %arg1: i32, %arg2: memref<16x128xf32, #tpu.memory_space<vmem>>, %arg3: memref<16x128xf32, #tpu.memory_space<vmem>>, %arg4: memref<1x128xf32, #tpu.memory_space<vmem>>, %arg5: memref<16x128xf32, #tpu.memory_space<vmem>>) attributes {dimension_semantics = [#tpu.dimension_semantics<parallel>, #tpu.dimension_semantics<arbitrary>], iteration_bounds = array<i64: 1, 1>, scalar_prefetch = 0 : i64, scratch_operands = 1 : i64, tpu.core_type = #tpu.core_type<tc>, window_params = [{transform_indices = @transform_0, window_bounds = array<i64: 16, 128>}, {transform_indices = @transform_1, window_bounds = array<i64: 16, 128>}, {transform_indices = @transform_2, window_bounds = array<i64: 1, 128>}]} {
    %c0_i32 = arith.constant 0 : i32
    %0 = arith.cmpi eq, %arg1, %c0_i32 : i32
    %1 = arith.extui %0 : i1 to i32
    %c0_i32_0 = arith.constant 0 : i32
    %2 = arith.cmpi ne, %1, %c0_i32_0 : i32
    scf.if %2 {
      %cst_14 = arith.constant 0.000000e+00 : f32
      %26 = vector.broadcast %cst_14 : f32 to vector<16x128xf32>
      %c0_15 = arith.constant 0 : index
      %c0_16 = arith.constant 0 : index
      %27 = vector.load %arg5[%c0_15, %c0_16] : memref<16x128xf32, #tpu.memory_space<vmem>>, vector<16x128xf32>
      tpu.vector_store %arg5[%c0_15, %c0_16], %26 {strides = array<i32>} : memref<16x128xf32, #tpu.memory_space<vmem>>, vector<16x128xf32>,
    } else {
    }
    %c0 = arith.constant 0 : index
    %c0_1 = arith.constant 0 : index
    %3 = vector.load %arg2[%c0, %c0_1] : memref<16x128xf32, #tpu.memory_space<vmem>>, vector<16x128xf32>
    %c0_2 = arith.constant 0 : index
    %c0_3 = arith.constant 0 : index
    %4 = vector.load %arg3[%c0_2, %c0_3] : memref<16x128xf32, #tpu.memory_space<vmem>>, vector<16x128xf32>
    %cst = arith.constant 0.000000e+00 : f32
    %5 = vector.broadcast %cst : f32 to vector<16x128xf32>
    %6 = arith.cmpf one, %4, %5 : vector<16x128xf32>
    %cst_4 = arith.constant 1.000000e-10 : f32
    %7 = vector.broadcast %cst_4 : f32 to vector<16x128xf32>
    %8 = arith.maximumf %3, %7 : vector<16x128xf32>
    %cst_5 = arith.constant 1.000000e+00 : f32
    %9 = vector.broadcast %cst_5 : f32 to vector<16x128xf32>
    %10 = arith.subf %9, %3 : vector<16x128xf32>
    %cst_6 = arith.constant 1.000000e-10 : f32
    %11 = vector.broadcast %cst_6 : f32 to vector<16x128xf32>
    %12 = arith.maximumf %10, %11 : vector<16x128xf32>
    %13 = arith.select %6, %8, %12 : vector<16x128xi1>, vector<16x128xf32>
    %14 = arith.select %6, %12, %8 : vector<16x128xi1>, vector<16x128xf32>
    %15 = arith.mulf %14, %14 : vector<16x128xf32>
    %cst_7 = arith.constant 0.000000e+00 : f32
    %16 = vector.broadcast %cst_7 : f32 to vector<16x128xf32>
    %17 = arith.subf %16, %15 : vector<16x128xf32>
    %18 = math.log %13 : vector<16x128xf32>
    %19 = arith.mulf %17, %18 : vector<16x128xf32>
    %c0_8 = arith.constant 0 : index
    %c0_9 = arith.constant 0 : index
    %20 = vector.load %arg5[%c0_8, %c0_9] : memref<16x128xf32, #tpu.memory_space<vmem>>, vector<16x128xf32>
    %21 = arith.addf %20, %19 : vector<16x128xf32>
    %c0_10 = arith.constant 0 : index
    %c0_11 = arith.constant 0 : index
    %22 = vector.load %arg5[%c0_10, %c0_11] : memref<16x128xf32, #tpu.memory_space<vmem>>, vector<16x128xf32>
    tpu.vector_store %arg5[%c0_10, %c0_11], %21 {strides = array<i32>} : memref<16x128xf32, #tpu.memory_space<vmem>>, vector<16x128xf32>,
    %c0_i32_12 = arith.constant 0 : i32
    %23 = arith.cmpi eq, %arg1, %c0_i32_12 : i32
    %24 = arith.extui %23 : i1 to i32
    %c0_i32_13 = arith.constant 0 : i32
    %25 = arith.cmpi ne, %24, %c0_i32_13 : i32
    scf.if %25 {
      %c0_14 = arith.constant 0 : index
      %c0_15 = arith.constant 0 : index
      %26 = vector.load %arg5[%c0_14, %c0_15] : memref<16x128xf32, #tpu.memory_space<vmem>>, vector<16x128xf32>
      %27 = vector.shape_cast %26 : vector<16x128xf32> to vector<1x16x128xf32>
      %cst_16 = arith.constant dense<0.000000e+00> : vector<1xf32>
      %28 = vector.multi_reduction <add>, %27, %cst_16 [1, 2] : vector<1x16x128xf32> to vector<1xf32>
      %29 = vector.shape_cast %28 : vector<1xf32> to vector<1x1x1xf32>
      %30 = vector.extract %29[0, 0, 0] : f32 from vector<1x1x1xf32>
      %cst_17 = arith.constant 4.8828125E-4 : f32
      %31 = arith.mulf %30, %cst_17 : f32
      %32 = vector.broadcast %31 : f32 to vector<1x128xf32>
      %c0_18 = arith.constant 0 : index
      %c0_19 = arith.constant 0 : index
      %33 = vector.load %arg4[%c0_18, %c0_19] : memref<1x128xf32, #tpu.memory_space<vmem>>, vector<1x128xf32>
      tpu.vector_store %arg4[%c0_18, %c0_19], %32 {strides = array<i32>} : memref<1x128xf32, #tpu.memory_space<vmem>>, vector<1x128xf32>,
    } else {
    }
    return
  }
  func.func @transform_0(%arg0: i32, %arg1: i32) -> (i32, i32) {
    %c1_i32 = arith.constant 1 : i32
    %0 = arith.muli %arg0, %c1_i32 : i32
    %1 = arith.addi %0, %arg1 : i32
    %c0_i32 = arith.constant 0 : i32
    %c0_i32_0 = arith.constant 0 : i32
    return %1, %c0_i32 : i32, i32
  }
  func.func @transform_1(%arg0: i32, %arg1: i32) -> (i32, i32) {
    %c1_i32 = arith.constant 1 : i32
    %0 = arith.muli %arg0, %c1_i32 : i32
    %1 = arith.addi %0, %arg1 : i32
    %c0_i32 = arith.constant 0 : i32
    %c0_i32_0 = arith.constant 0 : i32
    return %1, %c0_i32 : i32, i32
  }
  func.func @transform_2(%arg0: i32, %arg1: i32) -> (i32, i32) {
    %c0_i32 = arith.constant 0 : i32
    %c0_i32_0 = arith.constant 0 : i32
    return %arg0, %c0_i32 : i32, i32
  }
}

</mosaic_0001>

<bundles_post_ra>
// kernel: tpu_custom_call.1
= control target key start
LH: loop header
LB: loop body
LE: loop exit
PB: predicated region body
PF: predicated region fallthrough
CT: control target
= control target key end

     0   :  { %7 = vsyncpa [#allocation4], 0  ;;  %s263_s0 = inlined_call_operand.hbm [shape: f32[16,128], index: 0, kind: input, shape index: {}]   ;;  %s264_s1 = inlined_call_operand.hbm [shape: f32[16,128], index: 1, kind: input, shape index: {}]   ;;  %s265_s2 = inlined_call_operand.hbm [shape: f32[1,128], index: 2, kind: output, shape index: {}]  }
   0x1   :  { %8 = vsyncpa [#allocation7], 0 }
   0x2   :  { %9 = vsyncpa [#allocation5], 0  ;;  %s207_s9 = smov [#allocation3]   ;;  %s135_s13 = scalar_lea.hbm %s263_s0, 256 }
   0x3   :  { %s19_s10 = sshll.u32 %s207_s9, 4  ;;  %p136_p0 = scmp.ne.s32.totalorder %s263_s0, %s135_s13  ;;  %s20_s10 = int_to_ptr.vmem [resolvable:$true] %s19_s10 }
   0x4   :  { %p139_p1 = scmp.lt.u32.totalorder %s135_s13, %s263_s0 }
   0x6   :  { %p141_p2 = pnand %p139_p1, %p136_p0 }
   0x8   :  { %144 = shalt.err (!%p141_p2)
}
   0x9   :  { %s145_s18 = scalar_lea.vmem %s20_s10, 256  ;;  %p150_p4 = scmp.lt.s32.totalorder %s20_s10, %s20_s10 }
   0xa   :  { %p146_p3 = scmp.ne.s32.totalorder %s20_s10, %s145_s18  ;;  %p151_p5 = scmp.lt.s32.totalorder %s145_s18, %s145_s18 }
   0xc   :  { %p152_p6 = por %p151_p5, %p150_p4 }
   0xe   :  { %p153_p7 = pnand %p152_p6, %p146_p3 }
  0x10   :  { %156 = shalt.err (!%p153_p7)
}
  0x11   :  { %s208_s19 = smov 128   ;;  %s209_s20 = smov 8  }
  0x12   :  { %25 = dma.hbm_to_vmem [thread:$0]  %s263_s0, 256, %s20_s10, [#allocation4], %s208_s19, %s208_s19, %s209_s20  }
  0x13   :  { %s210_s23 = smov [#allocation6]   ;;  %s157_s27 = scalar_lea.hbm %s264_s1, 256 }
  0x14   :  { %s35_s24 = sshll.u32 %s210_s23, 4  ;;  %p158_p8 = scmp.ne.s32.totalorder %s264_s1, %s157_s27  ;;  %s36_s24 = int_to_ptr.vmem [resolvable:$true] %s35_s24 }
  0x15   :  { %p161_p9 = scmp.lt.u32.totalorder %s157_s27, %s264_s1 }
  0x17   :  { %p163_p10 = pnand %p161_p9, %p158_p8 }
  0x19   :  { %166 = shalt.err (!%p163_p10)
}
  0x1a   :  { %s167_s4 = scalar_lea.vmem %s36_s24, 256  ;;  %p172_p12 = scmp.lt.s32.totalorder %s36_s24, %s36_s24 }
  0x1b   :  { %p168_p11 = scmp.ne.s32.totalorder %s36_s24, %s167_s4  ;;  %p173_p13 = scmp.lt.s32.totalorder %s167_s4, %s167_s4 }
  0x1d   :  { %p174_p0 = por %p173_p13, %p172_p12 }
  0x1f   :  { %p175_p1 = pnand %p174_p0, %p168_p11 }
  0x21   :  { %178 = shalt.err (!%p175_p1)
}
  0x22   :  { %41 = dma.hbm_to_vmem [thread:$0]  %s264_s1, 256, %s36_s24, [#allocation7], %s208_s19, %s208_s19, %s209_s20  }
  0x23   :  { %201 = dma.done.wait [#allocation4], 256  }
  0x24   :  { %202 = vsyncadd [#allocation4], 4294967040 }
  0x25   :  { %203 = dma.done.wait [#allocation7], 256  }
  0x26   :  { %204 = vsyncadd [#allocation7], 4294967040  ;;  %v58_v0 = vld [vmem:[#allocation3] sm:$0xff]  ;;  %v59_v1 = vld [vmem:[#allocation3 + $0x8] sm:$0xff]  ;;  %s211_s1 = smov [#allocation8]  }
  0x27   :  { %v60_v2 = vld [vmem:[#allocation6] sm:$0xff]  ;;  %v61_v3 = vld [vmem:[#allocation6 + $0x8] sm:$0xff]  ;;  %v64_v4 = vmax.f32 %v58_v0, 1e-10  ;;  %v65_v5 = vmax.f32 %v59_v1, 1e-10 }
  0x28   :  { %v66_v6 = vsub.f32 1.0, %v58_v0  ;;  %v67_v7 = vsub.f32 1.0, %v59_v1  ;;  %vm62_vm0 = vcmp.ne.f32.partialorder %v60_v2, 0.0  ;;  %vm63_vm1 = vcmp.ne.f32.partialorder %v61_v3, 0.0  ;;  %s114_s6 = sshll.u32 %s211_s1, 4  ;;  %s115_s6 = int_to_ptr.vmem [resolvable:$true] %s114_s6 }
  0x29   :  { %s179_s9 = scalar_lea.vmem %s115_s6, 16  ;;  %s183_s10 = scalar_lea.vmem %s115_s6, 32 }
  0x2a   :  { %v68_v8 = vmax.f32 %v66_v6, 1e-10  ;;  %v69_v9 = vmax.f32 %v67_v7, 1e-10  ;;  %p180_p2 = scmp.ne.s32.totalorder %s115_s6, %s179_s9  ;;  %p184_p3 = scmp.lt.s32.totalorder %s115_s6, %s115_s6 }
  0x2b   :  { %p185_p4 = scmp.lt.s32.totalorder %s183_s10, %s179_s9 }
  0x2c   :  { %v70_v10 = vsel %vm62_vm0, %v64_v4, %v68_v8  ;;  %v71_v11 = vsel %vm63_vm1, %v65_v5, %v69_v9  ;;  %v72_v12 = vsel %vm62_vm0, %v68_v8, %v64_v4  ;;  %v73_v13 = vsel %vm63_vm1, %v69_v9, %v65_v5 }
  0x2d   :  { %131 = vlog2.f32 %v70_v10  ;;  %v74_v14 = vmul.f32 %v72_v12, %v72_v12  ;;  %v75_v15 = vmul.f32 %v73_v13, %v73_v13  ;;  %p186_p5 = por %p185_p4, %p184_p3 }
  0x2e   :  { %133 = vlog2.f32 %v71_v11 }
  0x2f   :  { %v76_v16 = vsub.f32 0.0, %v74_v14  ;;  %v77_v18 = vsub.f32 0.0, %v75_v15  ;;  %p187_p6 = pnand %p186_p5, %p180_p2 }
  0x37   :  { %v132_v17 = vpop.eup %131 }
  0x38   :  { %v134_v19 = vpop.eup %133  ;;  %v79_v20 = vmul.f32 0.6931472, %v132_v17 }
  0x39   :  { %v81_v21 = vmul.f32 0.6931472, %v134_v19 }
  0x3a   :  { %v82_v22 = vmul.f32 %v79_v20, %v76_v16 }
  0x3b   :  { %v83_v23 = vmul.f32 %v81_v21, %v77_v18 }
  0x3d   :  { %v95_v24 = vadd.f32 %v83_v23, %v82_v22 }
  0x3f   :  { %96 = vadd.xlane.f32.xlu0 %v95_v24 }
  0xcc   :  { %v97_v25 = vpop.xlane.xlu0 %96 }
  0xcd   :  { %v98_v26 = vrot.slane %v97_v25, 4 }
  0xcf   :  { %v99_v27 = vadd.f32 %v98_v26, %v97_v25 }
  0xd1   :  { %v100_v28 = vrot.slane %v99_v27, 2 }
  0xd3   :  { %v101_v29 = vadd.f32 %v100_v28, %v99_v27 }
  0xd5   :  { %v102_v30 = vrot.slane %v101_v29, 1 }
  0xd7   :  { %v103_v31 = vadd.f32 %v102_v30, %v101_v29 }
  0xd9   :  { %124 = vpush %v103_v31 }
 0x10a   :  { %s125_s7 = spop %124 }
 0x10b   :  { %s105_s8 = smul.f32 0.00048828125, %s125_s7 }
 0x10d   :  { %v106_v32 = vstv %s105_s8 }
 0x10e   :  { %107 = vst [vmem:[#allocation8] sm:$0x1] %v106_v32 }
 0x10f   :  { %190 = shalt.err (!%p187_p6)
}
 0x110   :  { %s191_s13 = scalar_lea.hbm %s265_s2, 16 }
 0x111   :  { %p192_p7 = scmp.ne.s32.totalorder %s265_s2, %s191_s13  ;;  %p195_p8 = scmp.lt.u32.totalorder %s191_s13, %s265_s2 }
 0x113   :  { %p197_p9 = pnand %p195_p8, %p192_p7 }
 0x115   :  { %200 = shalt.err (!%p197_p9)
}
 0x116   :  { %117 = dma.vmem_to_hbm [thread:$0]  %s115_s6, 16, %s265_s2, [#allocation5]  }
 0x117   :  { %205 = dma.done.wait [#allocation5], 16  }
 0x118   :  { %206 = vsyncadd [#allocation5], 4294967280 }
 0x119   :  { %121 = vsyncpa [#allocation4], 1 }
 0x11a   :  { %122 = vsyncpa [#allocation7], 1 }
 0x11b   :  { %123 = vsyncpa [#allocation5], 1 }

</bundles_post_ra>
